<compile_context>
chip_gen: v6e
topology: v6e:2x2x1
jax: 0.10.0
libtpu: 0.0.40
codegen_flags: <defaults>
</compile_context>

<pallas_src>
import functools

import jax
import jax.numpy as jnp
from jax.experimental import pallas as pl
from jax.experimental.pallas import tpu as pltpu

NUM_HEADS = 3
ENCODE_DIM = 16
IN_FEATS = 13
HID1 = 128      # encoder hidden width
CRIT1 = 512     # critic hidden 1
CRIT2 = 128     # critic hidden 2


def mimo_kernel(x_ref,
                w1_ref, b1_ref,    # block-diag encoder L1: [39,384] bf16, [1,384] f32
                w2_ref, b2_ref,    # block-diag encoder L2: [384,48] bf16, [1,48]  f32
                w3_ref, b3_ref,    # critic L1: [48,512]  bf16, [1,512] f32
                w4_ref, b4_ref,    # critic L2: [512,128] bf16, [1,128] f32
                w5_ref, b5_ref,    # critic L3: [128,3]   bf16, [1,3]   f32
                out_ref):
    # Hoist bias loads once.
    b1 = b1_ref[...]
    b2 = b2_ref[...]
    b3 = b3_ref[...]
    b4 = b4_ref[...]
    b5 = b5_ref[...]

    x = x_ref[...].astype(jnp.bfloat16)                               # [TB, 39]

    # Fused per-head encoders (block-diagonal); result == concat(enc_0, enc_1, enc_2).
    h = jnp.dot(x, w1_ref[...], preferred_element_type=jnp.float32) + b1
    h = jnp.maximum(h, 0.0)                                           # [TB, 384]
    cat = jnp.dot(h.astype(jnp.bfloat16), w2_ref[...],
                  preferred_element_type=jnp.float32) + b2            # [TB, 48]

    # Multihead critic.
    z = jnp.dot(cat.astype(jnp.bfloat16), w3_ref[...],
                preferred_element_type=jnp.float32) + b3
    z = jnp.maximum(z, 0.0)                                           # [TB, 512]
    z = jnp.dot(z.astype(jnp.bfloat16), w4_ref[...],
                preferred_element_type=jnp.float32) + b4
    z = jnp.maximum(z, 0.0)                                           # [TB, 128]
    y = jnp.dot(z.astype(jnp.bfloat16), w5_ref[...],
                preferred_element_type=jnp.float32) + b5              # [TB, 3]

    out_ref[...] = y


def init_params(key):
    """PyTorch-style uniform(-1/sqrt(fan_in), 1/sqrt(fan_in)) init, per-head f32."""
    ks = jax.random.split(key, 16)

    def lin(k, fan_in, fan_out):
        kw, kb = jax.random.split(k)
        bound = 1.0 / jnp.sqrt(fan_in)
        w = jax.random.uniform(kw, (fan_in, fan_out), jnp.float32, -bound, bound)
        b = jax.random.uniform(kb, (1, fan_out), jnp.float32, -bound, bound)
        return w, b

    w1s, b1s, w2s, b2s = [], [], [], []
    for i in range(NUM_HEADS):
        w1, b1 = lin(ks[2 * i], IN_FEATS, HID1)
        w2, b2 = lin(ks[2 * i + 1], HID1, ENCODE_DIM)
        w1s.append(w1); b1s.append(b1); w2s.append(w2); b2s.append(b2)
    w1 = jnp.stack(w1s)           # [H, 13, 128]
    b1 = jnp.stack(b1s)           # [H, 1, 128]
    w2 = jnp.stack(w2s)           # [H, 128, 16]
    b2 = jnp.stack(b2s)           # [H, 1, 16]

    w3, b3 = lin(ks[10], ENCODE_DIM * NUM_HEADS, CRIT1)
    w4, b4 = lin(ks[11], CRIT1, CRIT2)
    w5, b5 = lin(ks[12], CRIT2, NUM_HEADS)
    return (w1, b1, w2, b2, w3, b3, w4, b4, w5, b5)


def pack_params(params):
    """Pack per-head encoders into block-diagonal bf16 weights (+ f32 biases)."""
    (w1, b1, w2, b2, w3, b3, w4, b4, w5, b5) = params
    w1_bd = jnp.zeros((NUM_HEADS * IN_FEATS, NUM_HEADS * HID1), jnp.float32)
    w2_bd = jnp.zeros((NUM_HEADS * HID1, NUM_HEADS * ENCODE_DIM), jnp.float32)
    for i in range(NUM_HEADS):
        w1_bd = w1_bd.at[i * IN_FEATS:(i + 1) * IN_FEATS,
                         i * HID1:(i + 1) * HID1].set(w1[i])
        w2_bd = w2_bd.at[i * HID1:(i + 1) * HID1,
                         i * ENCODE_DIM:(i + 1) * ENCODE_DIM].set(w2[i])
    b1_cat = jnp.concatenate(list(b1), axis=-1)      # [1, 384]
    b2_cat = jnp.concatenate(list(b2), axis=-1)      # [1, 48]
    bf16 = jnp.bfloat16
    return (w1_bd.astype(bf16), b1_cat,
            w2_bd.astype(bf16), b2_cat,
            w3.astype(bf16), b3,
            w4.astype(bf16), b4,
            w5.astype(bf16), b5)


def _round_up(n, m):
    return ((n + m - 1) // m) * m


@functools.partial(jax.jit, static_argnames=("tile_b",))
def mimo_forward(x, packed_params, *, tile_b=512):
    B = x.shape[0]
    in_feats = NUM_HEADS * IN_FEATS
    x2d = x.reshape(B, in_feats)                     # lane-dense [B, 39]

    tb = min(tile_b, _round_up(B, 8))                # sublane-aligned batch tile
    Bp = _round_up(B, tb)                            # pad batch to a whole number of tiles
    if Bp != B:
        x2d = jnp.pad(x2d, ((0, Bp - B), (0, 0)))
    n_steps = Bp // tb

    weight_bytes = sum(int(p.size) * p.dtype.itemsize for p in packed_params)
    flops = 2 * Bp * (in_feats * NUM_HEADS * HID1
                      + NUM_HEADS * HID1 * NUM_HEADS * ENCODE_DIM
                      + NUM_HEADS * ENCODE_DIM * CRIT1
                      + CRIT1 * CRIT2
                      + CRIT2 * NUM_HEADS)
    bytes_accessed = Bp * in_feats * 4 + Bp * NUM_HEADS * 4 + weight_bytes

    def resident(p):
        return pl.BlockSpec(p.shape, lambda i: (0, 0))   # VMEM-resident across steps

    in_specs = ([pl.BlockSpec((tb, in_feats), lambda i: (i, 0))]
                + [resident(p) for p in packed_params])

    out2d = pl.pallas_call(
        mimo_kernel,
        out_shape=jax.ShapeDtypeStruct((Bp, NUM_HEADS), jnp.float32),
        grid=(n_steps,),
        in_specs=in_specs,
        out_specs=pl.BlockSpec((tb, NUM_HEADS), lambda i: (i, 0)),
        compiler_params=pltpu.CompilerParams(
            dimension_semantics=("parallel",),           # megacore-shardable on v7x
            vmem_limit_bytes=32 * 1024 * 1024),
        cost_estimate=pl.CostEstimate(
            flops=int(flops), transcendentals=0,
            bytes_accessed=int(bytes_accessed)),
    )(x2d, *packed_params)

    return out2d[:B, :, None]                        # unsqueeze(2) -> [B, H, 1]


def mimo_reference(x, params):
    """Pure-JAX f32 reference with the original per-head structure."""
    (w1, b1, w2, b2, w3, b3, w4, b4, w5, b5) = params
    enc = []
    for i in range(NUM_HEADS):
        h = jnp.maximum(x[:, i, :] @ w1[i] + b1[i], 0.0)
        enc.append(h @ w2[i] + b2[i])
    cat = jnp.concatenate(enc, axis=-1)
    z = jnp.maximum(cat @ w3 + b3, 0.0)
    z = jnp.maximum(z @ w4 + b4, 0.0)
    return (z @ w5 + b5)[:, :, None]


if __name__ == "__main__":
    key = jax.random.PRNGKey(0)
    kx, kp = jax.random.split(key)

    B = 32
    x = jax.random.normal(kx, (B, NUM_HEADS, IN_FEATS), jnp.float32)
    params = init_params(kp)
    packed = pack_params(params)

    out = mimo_forward(x, packed, tile_b=8)          # 4-step batch grid
    out = jax.block_until_ready(out)

    ref = mimo_reference(x, params)
    assert out.shape == (B, NUM_HEADS, 1), out.shape
    max_err = float(jnp.max(jnp.abs(out - ref)))
    # bf16 weights/activations with f32 accumulation -> relaxed tolerance vs f32 ref.
    assert max_err < 5e-2, f"mismatch vs f32 reference (max abs err {max_err})"

    print("KERNEL_OK")
</pallas_src>

<mosaic_0001>
module attributes {stable_mosaic.version = 11 : i64} {
  func.func @mimo_kernel(%arg0: i32, %arg1: memref<8x39xf32, #tpu.memory_space<vmem>>, %arg2: memref<39x384xbf16, #tpu.memory_space<vmem>>, %arg3: memref<1x384xf32, #tpu.memory_space<vmem>>, %arg4: memref<384x48xbf16, #tpu.memory_space<vmem>>, %arg5: memref<1x48xf32, #tpu.memory_space<vmem>>, %arg6: memref<48x512xbf16, #tpu.memory_space<vmem>>, %arg7: memref<1x512xf32, #tpu.memory_space<vmem>>, %arg8: memref<512x128xbf16, #tpu.memory_space<vmem>>, %arg9: memref<1x128xf32, #tpu.memory_space<vmem>>, %arg10: memref<128x3xbf16, #tpu.memory_space<vmem>>, %arg11: memref<1x3xf32, #tpu.memory_space<vmem>>, %arg12: memref<8x3xf32, #tpu.memory_space<vmem>>) attributes {dimension_semantics = [#tpu.dimension_semantics<parallel>], iteration_bounds = array<i64: 4>, scalar_prefetch = 0 : i64, scratch_operands = 0 : i64, tpu.core_type = #tpu.core_type<tc>, window_params = [{transform_indices = @transform_0, window_bounds = array<i64: 8, 39>}, {pipeline_mode = #tpu.pipeline_mode<synchronous>, transform_indices = @transform_1, window_bounds = array<i64: 39, 384>}, {pipeline_mode = #tpu.pipeline_mode<synchronous>, transform_indices = @transform_2, window_bounds = array<i64: 1, 384>}, {pipeline_mode = #tpu.pipeline_mode<synchronous>, transform_indices = @transform_3, window_bounds = array<i64: 384, 48>}, {pipeline_mode = #tpu.pipeline_mode<synchronous>, transform_indices = @transform_4, window_bounds = array<i64: 1, 48>}, {pipeline_mode = #tpu.pipeline_mode<synchronous>, transform_indices = @transform_5, window_bounds = array<i64: 48, 512>}, {pipeline_mode = #tpu.pipeline_mode<synchronous>, transform_indices = @transform_6, window_bounds = array<i64: 1, 512>}, {pipeline_mode = #tpu.pipeline_mode<synchronous>, transform_indices = @transform_7, window_bounds = array<i64: 512, 128>}, {pipeline_mode = #tpu.pipeline_mode<synchronous>, transform_indices = @transform_8, window_bounds = array<i64: 1, 128>}, {pipeline_mode = #tpu.pipeline_mode<synchronous>, transform_indices = @transform_9, window_bounds = array<i64: 128, 3>}, {pipeline_mode = #tpu.pipeline_mode<synchronous>, transform_indices = @transform_10, window_bounds = array<i64: 1, 3>}, {transform_indices = @transform_11, window_bounds = array<i64: 8, 3>}]} {
    %c0 = arith.constant 0 : index
    %c0_0 = arith.constant 0 : index
    %0 = vector.load %arg3[%c0, %c0_0] : memref<1x384xf32, #tpu.memory_space<vmem>>, vector<1x384xf32>
    %c0_1 = arith.constant 0 : index
    %c0_2 = arith.constant 0 : index
    %1 = vector.load %arg5[%c0_1, %c0_2] : memref<1x48xf32, #tpu.memory_space<vmem>>, vector<1x48xf32>
    %c0_3 = arith.constant 0 : index
    %c0_4 = arith.constant 0 : index
    %2 = vector.load %arg7[%c0_3, %c0_4] : memref<1x512xf32, #tpu.memory_space<vmem>>, vector<1x512xf32>
    %c0_5 = arith.constant 0 : index
    %c0_6 = arith.constant 0 : index
    %3 = vector.load %arg9[%c0_5, %c0_6] : memref<1x128xf32, #tpu.memory_space<vmem>>, vector<1x128xf32>
    %c0_7 = arith.constant 0 : index
    %c0_8 = arith.constant 0 : index
    %4 = vector.load %arg11[%c0_7, %c0_8] : memref<1x3xf32, #tpu.memory_space<vmem>>, vector<1x3xf32>
    %c0_9 = arith.constant 0 : index
    %c0_10 = arith.constant 0 : index
    %5 = vector.load %arg1[%c0_9, %c0_10] : memref<8x39xf32, #tpu.memory_space<vmem>>, vector<8x39xf32>
    %6 = arith.truncf %5 : vector<8x39xf32> to vector<8x39xbf16>
    %c0_11 = arith.constant 0 : index
    %c0_12 = arith.constant 0 : index
    %7 = vector.load %arg2[%c0_11, %c0_12] : memref<39x384xbf16, #tpu.memory_space<vmem>>, vector<39x384xbf16>
    %cst = arith.constant dense<0.000000e+00> : vector<8x384xf32>
    %8 = tpu.matmul %6, %7, %cst {dimension_numbers = #tpu.dot_dimension_numbers<[1], [0], [0], [1], [0, 0, 1, 1], [], []>} : vector<8x39xbf16>, vector<39x384xbf16>, vector<8x384xf32> -> vector<8x384xf32>
    %9 = vector.broadcast %0 : vector<1x384xf32> to vector<8x384xf32>
    %10 = arith.addf %8, %9 : vector<8x384xf32>
    %cst_13 = arith.constant 0.000000e+00 : f32
    %11 = vector.broadcast %cst_13 : f32 to vector<8x384xf32>
    %12 = arith.maximumf %10, %11 : vector<8x384xf32>
    %13 = arith.truncf %12 : vector<8x384xf32> to vector<8x384xbf16>
    %c0_14 = arith.constant 0 : index
    %c0_15 = arith.constant 0 : index
    %14 = vector.load %arg4[%c0_14, %c0_15] : memref<384x48xbf16, #tpu.memory_space<vmem>>, vector<384x48xbf16>
    %cst_16 = arith.constant dense<0.000000e+00> : vector<8x48xf32>
    %15 = tpu.matmul %13, %14, %cst_16 {dimension_numbers = #tpu.dot_dimension_numbers<[1], [0], [0], [1], [0, 0, 1, 1], [], []>} : vector<8x384xbf16>, vector<384x48xbf16>, vector<8x48xf32> -> vector<8x48xf32>
    %16 = vector.broadcast %1 : vector<1x48xf32> to vector<8x48xf32>
    %17 = arith.addf %15, %16 : vector<8x48xf32>
    %18 = arith.truncf %17 : vector<8x48xf32> to vector<8x48xbf16>
    %c0_17 = arith.constant 0 : index
    %c0_18 = arith.constant 0 : index
    %19 = vector.load %arg6[%c0_17, %c0_18] : memref<48x512xbf16, #tpu.memory_space<vmem>>, vector<48x512xbf16>
    %cst_19 = arith.constant dense<0.000000e+00> : vector<8x512xf32>
    %20 = tpu.matmul %18, %19, %cst_19 {dimension_numbers = #tpu.dot_dimension_numbers<[1], [0], [0], [1], [0, 0, 1, 1], [], []>} : vector<8x48xbf16>, vector<48x512xbf16>, vector<8x512xf32> -> vector<8x512xf32>
    %21 = vector.broadcast %2 : vector<1x512xf32> to vector<8x512xf32>
    %22 = arith.addf %20, %21 : vector<8x512xf32>
    %cst_20 = arith.constant 0.000000e+00 : f32
    %23 = vector.broadcast %cst_20 : f32 to vector<8x512xf32>
    %24 = arith.maximumf %22, %23 : vector<8x512xf32>
    %25 = arith.truncf %24 : vector<8x512xf32> to vector<8x512xbf16>
    %c0_21 = arith.constant 0 : index
    %c0_22 = arith.constant 0 : index
    %26 = vector.load %arg8[%c0_21, %c0_22] : memref<512x128xbf16, #tpu.memory_space<vmem>>, vector<512x128xbf16>
    %cst_23 = arith.constant dense<0.000000e+00> : vector<8x128xf32>
    %27 = tpu.matmul %25, %26, %cst_23 {dimension_numbers = #tpu.dot_dimension_numbers<[1], [0], [0], [1], [0, 0, 1, 1], [], []>} : vector<8x512xbf16>, vector<512x128xbf16>, vector<8x128xf32> -> vector<8x128xf32>
    %28 = vector.broadcast %3 : vector<1x128xf32> to vector<8x128xf32>
    %29 = arith.addf %27, %28 : vector<8x128xf32>
    %cst_24 = arith.constant 0.000000e+00 : f32
    %30 = vector.broadcast %cst_24 : f32 to vector<8x128xf32>
    %31 = arith.maximumf %29, %30 : vector<8x128xf32>
    %32 = arith.truncf %31 : vector<8x128xf32> to vector<8x128xbf16>
    %c0_25 = arith.constant 0 : index
    %c0_26 = arith.constant 0 : index
    %33 = vector.load %arg10[%c0_25, %c0_26] : memref<128x3xbf16, #tpu.memory_space<vmem>>, vector<128x3xbf16>
    %cst_27 = arith.constant dense<0.000000e+00> : vector<8x3xf32>
    %34 = tpu.matmul %32, %33, %cst_27 {dimension_numbers = #tpu.dot_dimension_numbers<[1], [0], [0], [1], [0, 0, 1, 1], [], []>} : vector<8x128xbf16>, vector<128x3xbf16>, vector<8x3xf32> -> vector<8x3xf32>
    %35 = vector.broadcast %4 : vector<1x3xf32> to vector<8x3xf32>
    %36 = arith.addf %34, %35 : vector<8x3xf32>
    %c0_28 = arith.constant 0 : index
    %c0_29 = arith.constant 0 : index
    %37 = vector.load %arg12[%c0_28, %c0_29] : memref<8x3xf32, #tpu.memory_space<vmem>>, vector<8x3xf32>
    tpu.vector_store %arg12[%c0_28, %c0_29], %36 {strides = array<i32>} : memref<8x3xf32, #tpu.memory_space<vmem>>, vector<8x3xf32>,
    return
  }
  func.func @transform_0(%arg0: i32) -> (i32, i32) {
    %c0_i32 = arith.constant 0 : i32
    %c0_i32_0 = arith.constant 0 : i32
    return %arg0, %c0_i32 : i32, i32
  }
  func.func @transform_1(%arg0: i32) -> (i32, i32) {
    %c0_i32 = arith.constant 0 : i32
    %c0_i32_0 = arith.constant 0 : i32
    %c0_i32_1 = arith.constant 0 : i32
    return %c0_i32, %c0_i32_0 : i32, i32
  }
  func.func @transform_2(%arg0: i32) -> (i32, i32) {
    %c0_i32 = arith.constant 0 : i32
    %c0_i32_0 = arith.constant 0 : i32
    %c0_i32_1 = arith.constant 0 : i32
    return %c0_i32, %c0_i32_0 : i32, i32
  }
  func.func @transform_3(%arg0: i32) -> (i32, i32) {
    %c0_i32 = arith.constant 0 : i32
    %c0_i32_0 = arith.constant 0 : i32
    %c0_i32_1 = arith.constant 0 : i32
    return %c0_i32, %c0_i32_0 : i32, i32
  }
  func.func @transform_4(%arg0: i32) -> (i32, i32) {
    %c0_i32 = arith.constant 0 : i32
    %c0_i32_0 = arith.constant 0 : i32
    %c0_i32_1 = arith.constant 0 : i32
    return %c0_i32, %c0_i32_0 : i32, i32
  }
  func.func @transform_5(%arg0: i32) -> (i32, i32) {
    %c0_i32 = arith.constant 0 : i32
    %c0_i32_0 = arith.constant 0 : i32
    %c0_i32_1 = arith.constant 0 : i32
    return %c0_i32, %c0_i32_0 : i32, i32
  }
  func.func @transform_6(%arg0: i32) -> (i32, i32) {
    %c0_i32 = arith.constant 0 : i32
    %c0_i32_0 = arith.constant 0 : i32
    %c0_i32_1 = arith.constant 0 : i32
    return %c0_i32, %c0_i32_0 : i32, i32
  }
  func.func @transform_7(%arg0: i32) -> (i32, i32) {
    %c0_i32 = arith.constant 0 : i32
    %c0_i32_0 = arith.constant 0 : i32
    %c0_i32_1 = arith.constant 0 : i32
    return %c0_i32, %c0_i32_0 : i32, i32
  }
  func.func @transform_8(%arg0: i32) -> (i32, i32) {
    %c0_i32 = arith.constant 0 : i32
    %c0_i32_0 = arith.constant 0 : i32
    %c0_i32_1 = arith.constant 0 : i32
    return %c0_i32, %c0_i32_0 : i32, i32
  }
  func.func @transform_9(%arg0: i32) -> (i32, i32) {
    %c0_i32 = arith.constant 0 : i32
    %c0_i32_0 = arith.constant 0 : i32
    %c0_i32_1 = arith.constant 0 : i32
    return %c0_i32, %c0_i32_0 : i32, i32
  }
  func.func @transform_10(%arg0: i32) -> (i32, i32) {
    %c0_i32 = arith.constant 0 : i32
    %c0_i32_0 = arith.constant 0 : i32
    %c0_i32_1 = arith.constant 0 : i32
    return %c0_i32, %c0_i32_0 : i32, i32
  }
  func.func @transform_11(%arg0: i32) -> (i32, i32) {
    %c0_i32 = arith.constant 0 : i32
    %c0_i32_0 = arith.constant 0 : i32
    return %arg0, %c0_i32 : i32, i32
  }
}

</mosaic_0001>

<bundles_post_ra>
// kernel: mimo_forward.1
= control target key start
LH: loop header
LB: loop body
LE: loop exit
PB: predicated region body
PF: predicated region fallthrough
CT: control target
= control target key end

     0   :  { %s1951_s17 = smov 0   ;;  %s2290_s0 = inlined_call_operand.vmem [shape: f32[32,39], index: 0, kind: input, shape index: {}]   ;;  %s2291_s1 = inlined_call_operand.vmem [shape: bf16[39,384], index: 1, kind: input, shape index: {}]   ;;  %s2292_s2 = inlined_call_operand.vmem [shape: f32[1,384], index: 2, kind: input, shape index: {}]   ;;  %s2293_s3 = inlined_call_operand.vmem [shape: bf16[384,48], index: 3, kind: input, shape index: {}]   ;;  %s2294_s4 = inlined_call_operand.vmem [shape: f32[1,48], index: 4, kind: input, shape index: {}]   ;;  %s2295_s5 = inlined_call_operand.vmem [shape: bf16[48,512], index: 5, kind: input, shape index: {}]   ;;  %s2296_s6 = inlined_call_operand.vmem [shape: f32[1,512], index: 6, kind: input, shape index: {}]   ;;  %s2297_s7 = inlined_call_operand.vmem [shape: bf16[512,128], index: 7, kind: input, shape index: {}]   ;;  %s2298_s8 = inlined_call_operand.vmem [shape: f32[1,128], index: 8, kind: input, shape index: {}]   ;;  %s2299_s9 = inlined_call_operand.vmem [shape: bf16[128,3], index: 9, kind: input, shape index: {}]   ;;  %s2300_s10 = inlined_call_operand.vmem [shape: f32[1,3], index: 10, kind: input, shape index: {}]   ;;  %s2301_s11 = inlined_call_operand.vmem [shape: f32[32,3], index: 11, kind: output, shape index: {}]  }
   0x1 LB: > { %s1535_s18 = sadd.s32 4294967295, %s1885_s17   ;;  %p1539_p0 = scmp.ge.s32.totalorder %s1885_s17, 1  ;;  %s1885_s17 = sphi %s1951_s17, %s21_s17  }
   0x2   : > { %p336_p1 = scmp.lt.s32.totalorder %s1885_s17, 5 }
   0x4   : > { %p337_p2 = pnand %p1539_p0, %p336_p1 }
   0x5   : > { %p374_p3 = scmp.lt.s32.totalorder (!%p337_p2), %s1535_s18, 3 }
   0x6   : > { %340 = sbr.rel (%p337_p2) target bundleno = 1042 (0x412), region = 64 }
   0xb   : > { %v398_v0 = vld [vmem:[%s2291_s1 + $0x30] sm:$0xff]  ;;  %vm460_vm0 = vcmask 1042432   ;;  %vm461_vm1 = vcmask 1043456   ;;  %v1887_v3 = vmov 65535   ;;  %v1789_v6 = vld [vmem:[%s2291_s1 + $0x1c] ss:$12 sps:$4 sm:$0xff]   ;;  %v401_v44 = vlaneseq }
   0xc   : > { %v1549_v1 = vcombine.high %v398_v0, %v398_v0  ;;  %v1548_v2 = vcombine.low %v398_v0, %v398_v0  ;;  %v462_v4 = vsel %vm460_vm0, 4294967295, %v1887_v3  ;;  %v1888_v7 = vmov 0   ;;  %v1797_v10 = vld [vmem:[%s2293_s3 + $0x78] sm:$0xff]   ;;  %s2303_s18 = smov (!%p374_p3, %s1535_s18), 3  ;;  %v1792_v12 = vld [vmem:[%s2291_s1 + $0x4] ss:$12 sps:$4 sm:$0xff]  }
   0xd   : > { %v463_v5 = vsel %vm461_vm1, %v462_v4, 0  ;;  %505 = vmatprep.mubr.bf16.mxu1 %v1888_v7  ;;  %v1791_v11 = vld [vmem:[%s2291_s1 + $0x18] ss:$12 sps:$4 sm:$0xff]   ;;  %1640 = vmatprep.subr.bf16.mxu0 %v1797_v10  ;;  %s1540_s12 = sshll.u32 %s2303_s18, 3  ;;  %v1799_v14 = vld [vmem:[%s2293_s3 + $0x70] sm:$0xff]   ;;  %v1801_v19 = vld [vmem:[%s2293_s3 + $0x68] sm:$0xff]  }
   0xe   : > { %v468_v8 = vand.u32 %v1549_v1, %v463_v5  ;;  %v465_v9 = vand.u32 %v1548_v2, %v463_v5  ;;  %v1798_v13 = vld [vmem:[%s2293_s3 + $0x38] sm:$0xff]   ;;  %s377_s19 = scalar_lea.vmem %s2290_s0, %s1540_s12  ;;  %v1794_v16 = vld [vmem:[%s2291_s1] ss:$12 sps:$4 sm:$0xff]   ;;  %v1800_v18 = vld [vmem:[%s2293_s3 + $0x30] sm:$0xff]   ;;  %vm456_vm2 = vcmask 318464   ;;  %v1889_v24 = vmov 0.0   ;;  %s381_s26 = scalar_lea.vmem %s2301_s11, %s1540_s12 }
   0xf   : > { %1641 = vmatpush3.bf16.msra.mxu0 %v1798_v13  ;;  %v1787_v15 = vld [vmem:[%s2291_s1 + $0x38] ss:$0 sps:$4 sm:$0xff]   ;;  %v388_v17 = vld [vmem:[%s377_s19] sm:$0xff]  ;;  %v1802_v20 = vld [vmem:[%s2293_s3 + $0x28] sm:$0xff]   ;;  %vm1890_vm3 = vmmov 0   ;;  %v2081_v45 = vshrl.u32 %v401_v44, 7 }
  0x10   : > { %483 = vmatprep.subr.bf16.mxu1 %v468_v8  ;;  %1642 = vmatprep.subr.bf16.mxu0 %v1799_v14  ;;  %v389_v21 = vpack.c.bf16 %v388_v17, %v388_v17  ;;  %v1804_v22 = vld [vmem:[%s2293_s3 + $0x60] sm:$0xff]   ;;  %v471_v23 = vand.u32 %v1787_v15, %v463_v5  ;;  %v1807_v26 = vld [vmem:[%s2293_s3 + $0x58] sm:$0xff]   ;;  %v1796_v29 = vld [vmem:[%s2291_s1 + $0x8] ss:$12 sps:$4 sm:$0xff]   ;;  %vm932_vm4 = vcmask 392192   ;;  %vm1480_vm5 = vcmask 23552  }
  0x11   : > { %484 = vmatpush1.bf16.msra.mxu1 %v465_v9  ;;  %v1805_v25 = vld [vmem:[%s2293_s3 + $0x20] sm:$0xff]   ;;  %v1808_v28 = vld [vmem:[%s2293_s3 + $0x18] sm:$0xff]   ;;  %v1810_v30 = vld [vmem:[%s2293_s3 + $0x50] sm:$0xff]   ;;  %v403_v46 = vsub.s32 0, %v2081_v45  ;;  %v407_v48 = vsub.s32 1, %v2081_v45  ;;  %v411_v58 = vsub.s32 2, %v2081_v45 }
  0x12   : > { %485 = vmatprep.subr.bf16.mxu1 %v1789_v6  ;;  %v1795_v27 = vld [vmem:[%s2291_s1 + $0x20] ss:$12 sps:$4 sm:$0xff]   ;;  %v1811_v31 = vld [vmem:[%s2293_s3 + $0x10] sm:$0xff]   ;;  %v1803_v32 = vld [vmem:[%s2293_s3 + $0xb8] sm:$0xff]  }
  0x13   : > { %1643 = vmatpush3.bf16.msra.mxu0 %v1800_v18  ;;  %v1806_v33 = vld [vmem:[%s2293_s3 + $0xb0] sm:$0xff]   ;;  %v1809_v34 = vld [vmem:[%s2293_s3 + $0xa8] sm:$0xff]   ;;  %v1812_v35 = vld [vmem:[%s2293_s3 + $0xa0] sm:$0xff]  }
  0x14   : > { %1644 = vmatprep.subr.bf16.mxu0 %v1801_v19  ;;  %v1813_v36 = vld [vmem:[%s2293_s3 + $0x48] sm:$0xff]   ;;  %v1815_v38 = vld [vmem:[%s2293_s3 + $0x98] sm:$0xff]   ;;  %v1816_v39 = vld [vmem:[%s2293_s3 + $0x40] sm:$0xff]  }
  0x15   : > { %486 = vmatpush1.bf16.msra.mxu1 %v1791_v11  ;;  %v1814_v37 = vld [vmem:[%s2293_s3 + $0x8] sm:$0xff]   ;;  %v1817_v40 = vld [vmem:[%s2293_s3] sm:$0xff]   ;;  %v1818_v41 = vld [vmem:[%s2293_s3 + $0x90] sm:$0xff]  }
  0x16   : > { %487 = vmatprep.subr.bf16.mxu1 %v1792_v12  ;;  %v1819_v42 = vld [vmem:[%s2293_s3 + $0x88] sm:$0xff]   ;;  %v1820_v43 = vld [vmem:[%s2293_s3 + $0x80] sm:$0xff]   ;;  %v1839_v18 = vld [vmem:[%s2297_s7 + $0x78] sm:$0xff]  }
  0x17   : > { %1645 = vmatpush3.bf16.msra.mxu0 %v1802_v20  ;;  %v383_v47 = vld [vmem:[%s2292_s2] sm:$0x7]  ;;  %v1823_v6 = vld [vmem:[%s2295_s5 + $0x44] ss:$16 sps:$4 sm:$0xff]   ;;  %v1826_v8 = vld [vmem:[%s2295_s5 + $0x4c] ss:$16 sps:$4 sm:$0xff]  }
  0x18   : > { %1646 = vmatprep.subr.bf16.mxu0 %v1804_v22  ;;  %v404_v49 = vrot.slane %v383_v47, %v403_v46  ;;  %v408_v50 = vrot.slane %v383_v47, %v407_v48  ;;  %v412_v62 = vrot.slane %v383_v47, %v411_v58  ;;  %v1821_v9 = vld [vmem:[%s2295_s5 + $0x40] ss:$16 sps:$4 sm:$0xff]   ;;  %v1824_v10 = vld [vmem:[%s2295_s5 + $0x48] ss:$16 sps:$4 sm:$0xff]   ;;  %v1832_v11 = vld [vmem:[%s2295_s5 + $0x2c] ss:$16 sps:$4 sm:$0xff]  }
  0x19   : > { %488 = vmatpush1.bf16.msra.mxu1 %v1794_v16  ;;  %v1827_v12 = vld [vmem:[%s2295_s5 + $0x20] ss:$16 sps:$4 sm:$0xff]   ;;  %v1830_v13 = vld [vmem:[%s2295_s5 + $0x28] ss:$16 sps:$4 sm:$0xff]   ;;  %v1835_v14 = vld [vmem:[%s2295_s5 + $0x4] ss:$16 sps:$4 sm:$0xff]  }
  0x1a   : > { %1724 = vmatprep.subr.bf16.mxu1 %v1889_v24  ;;  %v1838_v15 = vld [vmem:[%s2295_s5 + $0xc] ss:$16 sps:$4 sm:$0xff]   ;;  %v1833_v16 = vld [vmem:[%s2295_s5] ss:$16 sps:$4 sm:$0xff]   ;;  %v1836_v17 = vld [vmem:[%s2295_s5 + $0x8] ss:$16 sps:$4 sm:$0xff]  }
  0x1b   : > { %1647 = vmatpush3.bf16.msra.mxu0 %v1805_v25  ;;  %v1840_v19 = vld [vmem:[%s2297_s7 + $0xf8] sm:$0xff]   ;;  %v1553_v25 = vld [vmem:[%s2294_s4] ss:$0 sm:$0xff] }
  0x1c   : > { %1551 = vmatmul.mubr.msk.bf16.vlgmr.msra.gmra.mxu1 %vm456_vm2, %v389_v21  ;;  %1648 = vmatprep.subr.bf16.mxu0 %v1807_v26  ;;  %v1851_v44 = vld [vmem:[%s2297_s7 + $0x60] sm:$0xff]  }
  0x1d   : > { %1725 = vmatpush3.bf16.msra.mxu1 %v471_v23  ;;  %1730 = vmatprep.mubr.msk.bf16.mxu1 %vm1890_vm3, %v1889_v24  ;;  %v1852_v47 = vld [vmem:[%s2297_s7 + $0xe0] sm:$0xff]  }
  0x1e   : > { %1726 = vmatprep.subr.bf16.mxu1 %v1889_v24 }
  0x1f   : > { %1649 = vmatpush3.bf16.msra.mxu0 %v1808_v28 }
  0x20   : > { %1650 = vmatprep.subr.bf16.mxu0 %v1810_v30 }
  0x21   : > { %1727 = vmatpush3.bf16.msra.mxu1 %v1795_v27 }
  0x22   : > { %1728 = vmatprep.subr.bf16.mxu1 %v1889_v24 }
  0x23   : > { %1651 = vmatpush3.bf16.msra.mxu0 %v1811_v31  ;;  %v1841_v31 = vld [vmem:[%s2297_s7 + $0x38] sm:$0xff]  }
  0x24   : > { %1652 = vmatprep.subr.bf16.mxu0 %v1813_v36 }
  0x25   : > { %1729 = vmatpush3.bf16.msra.mxu1 %v1796_v29 }
  0x26   : > { %1734 = vmatprep.subr.bf16.mxu1 %v1889_v24 }
  0x27   : > { %1653 = vmatpush3.bf16.msra.mxu0 %v1814_v37 }
  0x28   : > { %1731 = vmatmul.mubr.msk.bf16.vlgmr.msra.gmra.mxu1 %vm456_vm2, %v389_v21  ;;  %1654 = vmatprep.subr.bf16.mxu0 %v1816_v39  ;;  %v1846_v39 = vld [vmem:[%s2297_s7 + $0xb0] sm:$0xff]  }
  0x29   : > { %1735 = vmatpush3.bf16.msra.mxu1 %v1803_v32  ;;  %1750 = vmatprep.mubr.msk.bf16.mxu1 %vm1890_vm3, %v1889_v24  ;;  %v1842_v32 = vld [vmem:[%s2297_s7 + $0xb8] sm:$0xff]  }
  0x2a   : > { %1736 = vmatprep.subr.bf16.mxu1 %v1889_v24 }
  0x2b   : > { %1655 = vmatpush3.bf16.msra.mxu0 %v1817_v40  ;;  %v1847_v40 = vld [vmem:[%s2297_s7 + $0x68] sm:$0xff]  }
  0x2c   : > { %946 = vmatprep.subr.bf16.mxu0 %v1823_v6 }
  0x2d   : > { %1737 = vmatpush3.bf16.msra.mxu1 %v1806_v33 }
  0x2e   : > { %1738 = vmatprep.subr.bf16.mxu1 %v1889_v24 }
  0x31   : > { %1739 = vmatpush3.bf16.msra.mxu1 %v1809_v34  ;;  %v1843_v34 = vld [vmem:[%s2297_s7 + $0x70] sm:$0xff]  }
  0x32   : > { %1740 = vmatprep.subr.bf16.mxu1 %v1889_v24 }
  0x35   : > { %1741 = vmatpush3.bf16.msra.mxu1 %v1812_v35  ;;  %v1844_v35 = vld [vmem:[%s2297_s7 + $0xf0] sm:$0xff]  }
  0x36   : > { %1742 = vmatprep.subr.bf16.mxu1 %v1889_v24 }
  0x39   : > { %1743 = vmatpush3.bf16.msra.mxu1 %v1815_v38  ;;  %v1845_v38 = vld [vmem:[%s2297_s7 + $0x30] sm:$0xff]  }
  0x3a   : > { %1744 = vmatprep.subr.bf16.mxu1 %v1889_v24 }
  0x3d   : > { %1745 = vmatpush3.bf16.msra.mxu1 %v1818_v41  ;;  %v1848_v41 = vld [vmem:[%s2297_s7 + $0xe8] sm:$0xff]  }
  0x3e   : > { %1746 = vmatprep.subr.bf16.mxu1 %v1889_v24 }
  0x41   : > { %1747 = vmatpush3.bf16.msra.mxu1 %v1819_v42  ;;  %v1849_v42 = vld [vmem:[%s2297_s7 + $0x28] sm:$0xff]  }
  0x42   : > { %1748 = vmatprep.subr.bf16.mxu1 %v1889_v24 }
  0x45   : > { %1749 = vmatpush3.bf16.msra.mxu1 %v1820_v43  ;;  %v1850_v43 = vld [vmem:[%s2297_s7 + $0xa8] sm:$0xff]  }
  0x46   : > { %987 = vmatprep.subr.bf16.mxu1 %v1826_v8 }
  0xdc   : > { %v507_v51 = vpop.f32.mrf.mxu1 }
  0xdd   : > { %v508_v52 = vadd.f32 %v507_v51, %v404_v49  ;;  %v1853_v49 = vld [vmem:[%s2297_s7 + $0x20] sm:$0xff]   ;;  %v1855_v51 = vld [vmem:[%s2297_s7 + $0x58] sm:$0xff]  }
  0xde   : > { %v509_v53 = vpop.f32.mrf.mxu1 }
  0xdf   : > { %v510_v54 = vadd.f32 %v509_v53, %v408_v50  ;;  %v554_v55 = vmax.f32 %v508_v52, 0.0  ;;  %v1854_v50 = vld [vmem:[%s2297_s7 + $0xa0] sm:$0xff]   ;;  %v1856_v52 = vld [vmem:[%s2297_s7 + $0xd8] sm:$0xff]  }
  0xe0   : > { %v511_v56 = vpop.f32.mrf.mxu1  ;;  %v1857_v53 = vld [vmem:[%s2297_s7 + $0x18] sm:$0xff]  }
  0xe1   : > { %v555_v57 = vmax.f32 %v510_v54, 0.0  ;;  %v557_v61 = vpack.c.bf16 %v554_v55, %v554_v55  ;;  %v1858_v54 = vld [vmem:[%s2297_s7 + $0x98] sm:$0xff]   ;;  %v1859_v55 = vld [vmem:[%s2297_s7 + $0x50] sm:$0xff]  }
  0xe2   : > { %v512_v59 = vpop.f32.mrf.mxu1  ;;  %v1860_v56 = vld [vmem:[%s2297_s7 + $0xd0] sm:$0xff]  }
  0xe3   : > { %v558_v60 = vpack.c.bf16 %v555_v57, %v555_v57  ;;  %v1861_v57 = vld [vmem:[%s2297_s7 + $0x10] sm:$0xff]  }
  0xe4   : > { %v1862_v59 = vld [vmem:[%s2297_s7 + $0x90] sm:$0xff]  }
  0xe5   : > { %790 = vmatprep.mubr.bf16.mxu0 %v558_v60  ;;  %v1863_v60 = vld [vmem:[%s2297_s7 + $0x48] sm:$0xff]  }
  0xe6   : > { %791 = vmatmul.mubr.bf16.vlgmr.msra.gmra.mxu0 %v557_v61  ;;  %v1864_v61 = vld [vmem:[%s2297_s7 + $0xc8] sm:$0xff]  }
  0xe7   : > { %968 = vmatprep.mubr.bf16.mxu0 %v1888_v7  ;;  %947 = vmatpush1.bf16.msra.mxu0 %v1821_v9 }
  0xe8   : > { %v548_v63 = vpop.f32.mrf.mxu1 }
  0xe9   : > { %v549_v0 = vadd.f32 %v548_v63, %v412_v62  ;;  %v1865_v62 = vld [vmem:[%s2297_s7 + $0x8] sm:$0xff]  }
  0xea   : > { %v1732_v1 = vpop.f32.mrf.mxu1  ;;  %v1866_v63 = vld [vmem:[%s2297_s7 + $0x88] sm:$0xff]  }
  0xeb   : > { %v556_v2 = vmax.f32 %v549_v0, 0.0  ;;  %v1867_v0 = vld [vmem:[%s2297_s7 + $0x40] sm:$0xff]  }
  0xec   : > { %v551_v3 = vpop.f32.mrf.mxu1  ;;  %v1868_v1 = vld [vmem:[%s2297_s7 + $0xc0] sm:$0xff]  }
  0xed   : > { %v559_v4 = vpack.c.bf16 %v556_v2, %v556_v2  ;;  %v1869_v2 = vld [vmem:[%s2297_s7] sm:$0xff]  }
  0xee   : > { %v1733_v5 = vpop.f32.mrf.mxu1  ;;  %v1870_v3 = vld [vmem:[%s2297_s7 + $0x80] sm:$0xff]  }
  0xef   : > { %1751 = vmatmul.mubr.bf16.vlgmr.msra.gmra.mxu1 %v559_v4  ;;  %v385_v4 = vld [vmem:[%s2296_s6] sm:$0xf]  ;;  %v866_v5 = vsub.s32 3, %v2081_v45 }
  0xf0   : > { %1009 = vmatprep.mubr.bf16.mxu1 %v1888_v7  ;;  %988 = vmatpush1.bf16.msra.mxu1 %v1824_v10  ;;  %v1829_v7 = vld [vmem:[%s2295_s5 + $0x24] ss:$16 sps:$4 sm:$0xff]   ;;  %v855_v6 = vrot.slane %v385_v4, %v403_v46  ;;  %v863_v8 = vrot.slane %v385_v4, %v411_v58  ;;  %v859_v9 = vrot.slane %v385_v4, %v407_v48  ;;  %v1871_v48 = vld [vmem:[%s2299_s9 + $0x38] sm:$0xff]  }
  0xf1   : > { %948 = vmatprep.subr.bf16.mxu0 %v1829_v7  ;;  %989 = vmatprep.subr.bf16.mxu1 %v1832_v11  ;;  %v867_v10 = vrot.slane %v385_v4, %v866_v5 }
  0xf2   : > { %949 = vmatpush1.bf16.msra.mxu0 %v1827_v12 }
  0xf3   : > { %950 = vmatprep.subr.bf16.mxu0 %v1835_v14 }
  0xf4   : > { %990 = vmatpush1.bf16.msra.mxu1 %v1830_v13 }
  0xf5   : > { %991 = vmatprep.subr.bf16.mxu1 %v1838_v15 }
  0xf6   : > { %951 = vmatpush1.bf16.msra.mxu0 %v1833_v16 }
  0xf7   : > { %1671 = vmatprep.subr.bf16.mxu0 %v1839_v18 }
  0xf8   : > { %992 = vmatpush1.bf16.msra.mxu1 %v1836_v17 }
  0xf9   : > { %1693 = vmatprep.subr.bf16.mxu1 %v1840_v19 }
 0x1a6   : > { %v1656_v20 = vpop.f32.mrf.mxu0 }
 0x1a8   : > { %v1657_v21 = vpop.f32.mrf.mxu0 }
 0x1a9   : > { %v1658_v22 = vadd.f32 %v1657_v21, %v1656_v20 }
 0x1aa   : > { %v1659_v23 = vpop.f32.mrf.mxu0 }
 0x1ab   : > { %v793_v27 = vadd.f32 %v1658_v22, %v1553_v25 }
 0x1ac   : > { %v1660_v26 = vpop.f32.mrf.mxu0 }
 0x1af   : > { %v832_v28 = vpop.f32.mrf.mxu1 }
 0x1b0   : > { %v833_v29 = vadd.f32 %v832_v28, %v793_v27  ;;  %v1872_v28 = vld [vmem:[%s2299_s9 + $0x30] sm:$0xff]  }
 0x1b1   : > { %v1752_v30 = vpop.f32.mrf.mxu1 }
 0x1b2   : > { %v838_v33 = vpack.c.bf16 %v833_v29, %v833_v29  ;;  %v1873_v29 = vld [vmem:[%s2299_s9 + $0x28] sm:$0xff]   ;;  %v1874_v30 = vld [vmem:[%s2299_s9 + $0x20] sm:$0xff]  }
 0x1b3   : > { %v835_v36 = vpop.f32.mrf.mxu1 }
 0x1b4   : > { %1590 = vmatmul.mubr.msk.bf16.vlgmr.msra.gmra.mxu0 %vm932_vm4, %v838_v33  ;;  %1591 = vmatmul.mubr.msk.bf16.vlgmr.msra.gmra.mxu1 %vm932_vm4, %v838_v33  ;;  %v1877_v33 = vld [vmem:[%s2299_s9 + $0x8] sm:$0xff]  }
 0x1b5   : > { %v1753_v37 = vpop.f32.mrf.mxu1  ;;  %1672 = vmatpush3.bf16.msra.mxu0 %v1841_v31  ;;  %1694 = vmatpush3.bf16.msra.mxu1 %v1842_v32  ;;  %v1875_v31 = vld [vmem:[%s2299_s9 + $0x18] sm:$0xff]   ;;  %v1876_v32 = vld [vmem:[%s2299_s9 + $0x10] sm:$0xff]  }
 0x1b6   : > { %1673 = vmatprep.subr.bf16.mxu0 %v1843_v34  ;;  %1695 = vmatprep.subr.bf16.mxu1 %v1844_v35  ;;  %v1878_v34 = vld [vmem:[%s2299_s9] sm:$0xff]  }
 0x1b7   : > { %v1592_v37 = vld [vmem:[%s2298_s8] ss:$0 sm:$0xff] }
 0x1b9   : > { %1674 = vmatpush3.bf16.msra.mxu0 %v1845_v38  ;;  %1696 = vmatpush3.bf16.msra.mxu1 %v1846_v39 }
 0x1ba   : > { %1675 = vmatprep.subr.bf16.mxu0 %v1847_v40  ;;  %1697 = vmatprep.subr.bf16.mxu1 %v1848_v41 }
 0x1bd   : > { %1676 = vmatpush3.bf16.msra.mxu0 %v1849_v42  ;;  %1698 = vmatpush3.bf16.msra.mxu1 %v1850_v43 }
 0x1be   : > { %1677 = vmatprep.subr.bf16.mxu0 %v1851_v44  ;;  %1699 = vmatprep.subr.bf16.mxu1 %v1852_v47 }
 0x1c1   : > { %1678 = vmatpush3.bf16.msra.mxu0 %v1853_v49  ;;  %1700 = vmatpush3.bf16.msra.mxu1 %v1854_v50 }
 0x1c2   : > { %1679 = vmatprep.subr.bf16.mxu0 %v1855_v51  ;;  %1701 = vmatprep.subr.bf16.mxu1 %v1856_v52  ;;  %v1625_v52 = vld [vmem:[%s2300_s10] ss:$0 sm:$0xff] }
 0x1c5   : > { %1680 = vmatpush3.bf16.msra.mxu0 %v1857_v53  ;;  %1702 = vmatpush3.bf16.msra.mxu1 %v1858_v54 }
 0x1c6   : > { %1681 = vmatprep.subr.bf16.mxu0 %v1859_v55  ;;  %1703 = vmatprep.subr.bf16.mxu1 %v1860_v56 }
 0x1c9   : > { %1682 = vmatpush3.bf16.msra.mxu0 %v1861_v57  ;;  %1704 = vmatpush3.bf16.msra.mxu1 %v1862_v59 }
 0x1ca   : > { %1683 = vmatprep.subr.bf16.mxu0 %v1863_v60  ;;  %1705 = vmatprep.subr.bf16.mxu1 %v1864_v61 }
 0x1cd   : > { %1684 = vmatpush3.bf16.msra.mxu0 %v1865_v62  ;;  %1706 = vmatpush3.bf16.msra.mxu1 %v1866_v63 }
 0x1ce   : > { %1685 = vmatprep.subr.bf16.mxu0 %v1867_v0  ;;  %1707 = vmatprep.subr.bf16.mxu1 %v1868_v1 }
 0x1d1   : > { %1686 = vmatpush3.bf16.msra.mxu0 %v1869_v2  ;;  %1708 = vmatpush3.bf16.msra.mxu1 %v1870_v3 }
 0x1d2   : > { %1754 = vmatprep.subr.bf16.mxu0 %v1889_v24 }
 0x274   : > { %v970_v7 = vpop.f32.mrf.mxu0  ;;  %v1011_v11 = vpop.f32.mrf.mxu1 }
 0x275   : > { %v971_v12 = vadd.f32 %v970_v7, %v855_v6  ;;  %v1012_v13 = vadd.f32 %v1011_v11, %v863_v8 }
 0x276   : > { %v972_v14 = vpop.f32.mrf.mxu0  ;;  %v1013_v15 = vpop.f32.mrf.mxu1 }
 0x277   : > { %v973_v16 = vadd.f32 %v972_v14, %v859_v9  ;;  %v1014_v17 = vadd.f32 %v1013_v15, %v867_v10  ;;  %v1018_v18 = vmax.f32 %v971_v12, 0.0  ;;  %v1020_v19 = vmax.f32 %v1012_v13, 0.0 }
 0x278   : > { %v974_v20 = vpop.f32.mrf.mxu0  ;;  %v1015_v21 = vpop.f32.mrf.mxu1 }
 0x279   : > { %v1019_v46 = vmax.f32 %v973_v16, 0.0  ;;  %v1021_v22 = vmax.f32 %v1014_v17, 0.0  ;;  %v1022_v26 = vpack.c.bf16 %v1018_v18, %v1018_v18  ;;  %v1024_v27 = vpack.c.bf16 %v1020_v19, %v1020_v19 }
 0x27a   : > { %v975_v23 = vpop.f32.mrf.mxu0  ;;  %v1016_v58 = vpop.f32.mrf.mxu1 }
 0x27b   : > { %v1023_v25 = vpack.c.bf16 %v1019_v46, %v1019_v46  ;;  %v1025_v45 = vpack.c.bf16 %v1021_v22, %v1021_v22 }
 0x27d   : > { %1320 = vmatprep.mubr.bf16.mxu0 %v1023_v25  ;;  %1360 = vmatprep.mubr.bf16.mxu1 %v1025_v45 }
 0x27e   : > { %1321 = vmatmul.mubr.bf16.vlgmr.msra.gmra.mxu0 %v1022_v26  ;;  %1361 = vmatmul.mubr.bf16.vlgmr.msra.gmra.mxu1 %v1024_v27 }
 0x27f   : > { %1755 = vmatpush3.bf16.msra.mxu0 %v1871_v48  ;;  %1770 = vmatprep.mubr.msk.bf16.mxu0 %vm1890_vm3, %v1889_v24 }
 0x280   : > { %1756 = vmatprep.subr.bf16.mxu0 %v1889_v24 }
 0x283   : > { %1757 = vmatpush3.bf16.msra.mxu0 %v1872_v28 }
 0x284   : > { %1758 = vmatprep.subr.bf16.mxu0 %v1889_v24 }
 0x287   : > { %1759 = vmatpush3.bf16.msra.mxu0 %v1873_v29 }
 0x288   : > { %1760 = vmatprep.subr.bf16.mxu0 %v1889_v24 }
 0x28b   : > { %1761 = vmatpush3.bf16.msra.mxu0 %v1874_v30 }
 0x28c   : > { %1762 = vmatprep.subr.bf16.mxu0 %v1889_v24 }
 0x28f   : > { %1763 = vmatpush3.bf16.msra.mxu0 %v1875_v31 }
 0x290   : > { %1764 = vmatprep.subr.bf16.mxu0 %v1889_v24 }
 0x293   : > { %1765 = vmatpush3.bf16.msra.mxu0 %v1876_v32 }
 0x294   : > { %1766 = vmatprep.subr.bf16.mxu0 %v1889_v24 }
 0x297   : > { %1767 = vmatpush3.bf16.msra.mxu0 %v1877_v33 }
 0x298   : > { %1768 = vmatprep.subr.bf16.mxu0 %v1889_v24 }
 0x29b   : > { %1769 = vmatpush3.bf16.msra.mxu0 %v1878_v34 }
 0x33e   : > { %v1687_v35 = vpop.f32.mrf.mxu0  ;;  %v1709_v36 = vpop.f32.mrf.mxu1 }
 0x340   : > { %v1688_v38 = vpop.f32.mrf.mxu0  ;;  %v1710_v39 = vpop.f32.mrf.mxu1 }
 0x341   : > { %v1689_v40 = vadd.f32 %v1688_v38, %v1687_v35  ;;  %v1711_v44 = vadd.f32 %v1710_v39, %v1709_v36 }
 0x342   : > { %v1690_v41 = vpop.f32.mrf.mxu0  ;;  %v1712_v42 = vpop.f32.mrf.mxu1 }
 0x343   : > { %v1323_v43 = vadd.f32 %v1689_v40, %v1592_v37 }
 0x344   : > { %v1691_v24 = vpop.f32.mrf.mxu0  ;;  %v1713_v47 = vpop.f32.mrf.mxu1 }
 0x345   : > { %v1363_v49 = vadd.f32 %v1711_v44, %v1323_v43 }
 0x347   : > { %v1368_v50 = vmax.f32 %v1363_v49, 0.0 }
 0x349   : > { %v1369_v51 = vpack.c.bf16 %v1368_v50, %v1368_v50 }
 0x34b   : > { %1771 = vmatmul.mubr.bf16.vlgmr.msra.gmra.mxu0 %v1369_v51 }
 0x40b   : > { %v1474_v53 = vpop.f32.mrf.mxu0 }
 0x40c   : > { %v1475_v54 = vadd.f32 %v1625_v52, %v1474_v53 }
 0x40d   : > { %v1772_v55 = vpop.f32.mrf.mxu0 }
 0x40e   : > { %1481 = vst.msk [vmem:[%s381_s26] sm:$0xff] %vm1480_vm5, %v1475_v54 }
 0x40f   : > { %v1477_v56 = vpop.f32.mrf.mxu0 }
 0x411   : > { %v1773_v57 = vpop.f32.mrf.mxu0 }
 0x412 PF: > { %s21_s17 = sadd.s32 1, %s1885_s17  }
 0x413   : > { %p18_p4 = scmp.ge.s32.totalorder %s21_s17, 6  }
 0x415   :  { %20 = sbr.rel (!%p18_p4) target bundleno = 1 (0x1), region = 94 }

</bundles_post_ra>
